<compile_context>
chip_gen: v7x
topology: tpu7x:2x2x1
jax: 0.10.0
libtpu: 0.0.40
codegen_flags: <defaults>
</compile_context>

<pallas_src>
import numpy as np
import jax
import jax.numpy as jnp
from jax import lax
from jax.experimental import pallas as pl
from jax.experimental.pallas import tpu as pltpu

POOL1 = 4   # block1 AvgPool2d(1, 4): kernel 1, stride 4 -> strided subsample in time
POOL2 = 8   # block2 AvgPool2d(1, 8)


def _elu(x):
    # ELU(x) = x if x > 0 else exp(x) - 1 ; clamp the exp argument so no inf appears.
    return jnp.where(x > 0, x, jnp.exp(jnp.minimum(x, 0.0)) - 1.0)


def eegnet_kernel(x_ref, w1_ref, b1_ref, w2_ref, b2_ref, wclf_ref, bclf_ref, out_ref):
    """One batch block; batch stays on the row (sublane) axis everywhere, so no
    transposes are needed in the wrapper or the kernel.

    x_ref   : (Bblk, C*L)       w1_ref  : (C*L, DF1*nq)    b1_ref : (1, DF1*nq)
    w2_ref  : (DF1*nq, F2*L2)   b2_ref  : (1, F2*L2)
    wclf_ref: (F2*L2, N)        bclf_ref: (1, N)           out_ref: (Bblk, N)
    """
    x = x_ref[...]                                               # (Bblk, C*L)

    # block1: temporal 'same' conv -> bn1 -> electrode depthwise conv -> bn2, with the
    # stride-4 pool hoisted/folded -> one MXU matmul (DEFAULT precision: single bf16
    # pass, f32 accumulate), then ELU (f32 on the EUP).
    h = jnp.dot(x, w1_ref[...], preferred_element_type=jnp.float32) + b1_ref[...]
    h = _elu(h)                                                  # (Bblk, DF1*nq)
    # TODO(synk): block1/block2 Dropout are eval-mode identities (no RNG mask in kernel).

    # block2: depthwise temporal conv -> 1x1 pointwise conv -> bn3, with the stride-8
    # pool folded -> second MXU matmul, then ELU.
    z = jnp.dot(h, w2_ref[...], preferred_element_type=jnp.float32) + b2_ref[...]
    z = _elu(z)                                                  # (Bblk, F2*L2)

    # flatten (columns already in torch-Flatten order: f2-major, time-minor) + classifier.
    y = jnp.dot(z, wclf_ref[...], preferred_element_type=jnp.float32) + bclf_ref[...]
    out_ref[...] = y.astype(out_ref.dtype)                       # (Bblk, N)


def fold_eegnet_params(p, C, L):
    """Fold convs + eval-mode BN + avg-pools into two matrices (+bias rows) and the
    classifier.  Pure NumPy in float64; runs ONCE per parameter set -- cache the result
    and reuse it for every forward call instead of re-folding per batch."""
    f64 = lambda a: np.asarray(a, np.float64)
    w1, wd, wsd, wp = f64(p["w1"]), f64(p["wd"]), f64(p["wsd"]), f64(p["wp"])
    s1, b1 = f64(p["bn1_scale"]), f64(p["bn1_shift"])
    s2, b2 = f64(p["bn2_scale"]), f64(p["bn2_shift"])
    s3, b3 = f64(p["bn3_scale"]), f64(p["bn3_shift"])
    F1, K1 = w1.shape
    DF1, K2 = wsd.shape
    F2 = wp.shape[0]
    D = DF1 // F1

    L1 = (L - 1) // POOL1 + 1             # length after block1 avgpool
    L2 = (L1 - 1) // POOL2 + 1            # length after block2 avgpool
    padL1 = (K1 - 1) // 2                 # torch padding='same' left pad (even kernels)
    padL2 = (K2 - 1) // 2

    # Pool hoisting: block2 only reads block1's pooled output at positions
    # q = POOL2*p' + j - padL2 -> compute block1 only at those L2*K2 (deduped) columns.
    q_all = (POOL2 * np.arange(L2)[:, None] + np.arange(K2)[None, :] - padL2).ravel()
    needed_q = np.unique(q_all[(q_all >= 0) & (q_all < L1)])           # (nq,)
    nq = needed_q.shape[0]
    f_of_o = np.arange(DF1) // D          # F1 group feeding each depthwise output

    # ---- operator 1: x[c, l] -> pre-ELU block1 output at (o, q in needed_q) ----
    # coefficient of x[:, l] for pooled position q is w1[f, l - POOL1*q + padL1].
    j1 = np.arange(L)[:, None] - POOL1 * needed_q[None, :] + padL1     # (L, nq)
    valid1 = (j1 >= 0) & (j1 < K1)
    Tg = np.where(valid1[None], w1[:, np.clip(j1, 0, K1 - 1)], 0.0)    # (F1, L, nq)
    Tg = (Tg * s1[:, None, None])[f_of_o]                              # bn1 scale, expand to DF1
    S = s2[:, None] * wd                                               # bn2 scale * electrode mix
    W1 = np.einsum("oc,olq->cloq", S, Tg).reshape(C * L, DF1 * nq)
    bias1 = s2 * b1[f_of_o] * wd.sum(axis=1) + b2                      # bn1 shift thru dconv + bn2 shift
    b1row = np.repeat(bias1, nq)[None, :]                              # (1, DF1*nq)

    # ---- operator 2: elu(block1) at (o, q) -> pre-ELU block2 output at (f2, p') ----
    j2 = needed_q[:, None] - POOL2 * np.arange(L2)[None, :] + padL2    # (nq, L2)
    valid2 = (j2 >= 0) & (j2 < K2)
    T2 = np.where(valid2[None], wsd[:, np.clip(j2, 0, K2 - 1)], 0.0)   # (DF1, nq, L2)
    A = s3[:, None] * wp                                               # bn3 scale * pointwise conv
    W2 = np.einsum("no,oqp->oqnp", A, T2).reshape(DF1 * nq, F2 * L2)
    b2row = np.repeat(b3, L2)[None, :]                                 # (1, F2*L2)

    # ---- classifier (torch Flatten order f2-major / time-minor == our column layout) ----
    wclfT = f64(p["wclf"]).T                                           # (F2*L2, N)
    bclfrow = f64(p["bclf"])[None, :]                                  # (1, N)

    dev = lambda a: jnp.asarray(a, jnp.float32)
    return tuple(dev(a) for a in (W1, b1row, W2, b2row, wclfT, bclfrow))


def eegnet_pallas(x, folded, block_b=512):
    """x: (B, C, L) float32, folded = fold_eegnet_params(params, C, L) -> logits (B, N).

    block_b: target samples per grid step.  The block is capped at ceil(B/128/2)*128 so
    the grid keeps >= 2 balanced blocks (dual-TensorCore sharding on v7x via
    dimension_semantics=("parallel",)); the extra grid step is ~free on v5e/v6e."""
    W1, b1row, W2, b2row, wclfT, bclfrow = folded
    B, C, L = x.shape
    CL = C * L
    assert W1.shape[0] == CL, "folded operators do not match (C, L)"
    N = wclfT.shape[1]

    lane_tiles = pl.cdiv(B, 128)                        # 128-sample tiles needed
    blk_tiles = max(1, min(max(block_b // 128, 1), pl.cdiv(lane_tiles, 2)))
    Bblk = blk_tiles * 128
    n_blocks = pl.cdiv(B, Bblk)
    B_pad = n_blocks * Bblk

    # Free reshape of the contiguous (B, C, L) input -- no wrapper-side transpose; pad
    # batch rows with zeros only when B is not a block multiple (sliced off below).
    x2 = x.reshape(B, CL).astype(jnp.float32)
    if B_pad != B:
        x2 = jnp.pad(x2, ((0, B_pad - B), (0, 0)))

    weights = (W1, b1row, W2, b2row, wclfT, bclfrow)
    # Weight/bias block indices never change, so the pipeline fetches them once.  For
    # very large C*L on v7x (64 MiB VMEM) add pipeline_mode=pl.Buffered(1) here or raise
    # pltpu.CompilerParams(vmem_limit_bytes=...); unnecessary at these sizes.
    in_specs = [pl.BlockSpec((Bblk, CL), lambda i: (i, 0))] + [
        pl.BlockSpec(w.shape, lambda i: (0, 0)) for w in weights
    ]

    out = pl.pallas_call(
        eegnet_kernel,
        out_shape=jax.ShapeDtypeStruct((B_pad, N), jnp.float32),
        grid=(n_blocks,),
        in_specs=in_specs,
        out_specs=pl.BlockSpec((Bblk, N), lambda i: (i, 0)),
        compiler_params=pltpu.CompilerParams(dimension_semantics=("parallel",)),
    )(x2, *weights)
    return out[:B]                                       # (B, N)


def eegnet_reference(x, p, F1, DF1):
    """Pure-JAX reference matching PyTorch EEGNet (eval mode), full f32 precision."""
    dn = ("NCHW", "OIHW", "NCHW")
    hp = lax.Precision.HIGHEST
    K1 = p["w1_4d"].shape[-1]
    K2 = p["wsd_4d"].shape[-1]
    padL1 = (K1 - 1) // 2
    padL2 = (K2 - 1) // 2
    h = x[:, None, :, :]
    h = lax.conv_general_dilated(h, p["w1_4d"], (1, 1),
                                 padding=((0, 0), (padL1, K1 - 1 - padL1)),
                                 dimension_numbers=dn, precision=hp)
    h = h * p["bn1_scale"][None, :, None, None] + p["bn1_shift"][None, :, None, None]
    h = lax.conv_general_dilated(h, p["wd_4d"], (1, 1), padding=((0, 0), (0, 0)),
                                 dimension_numbers=dn, feature_group_count=F1,
                                 precision=hp)
    h = h * p["bn2_scale"][None, :, None, None] + p["bn2_shift"][None, :, None, None]
    h = jnp.where(h > 0, h, jnp.exp(jnp.minimum(h, 0.0)) - 1.0)
    h = h[:, :, :, ::POOL1]
    h = lax.conv_general_dilated(h, p["wsd_4d"], (1, 1),
                                 padding=((0, 0), (padL2, K2 - 1 - padL2)),
                                 dimension_numbers=dn, feature_group_count=DF1,
                                 precision=hp)
    h = lax.conv_general_dilated(h, p["wp_4d"], (1, 1), padding=((0, 0), (0, 0)),
                                 dimension_numbers=dn, precision=hp)
    h = h * p["bn3_scale"][None, :, None, None] + p["bn3_shift"][None, :, None, None]
    h = jnp.where(h > 0, h, jnp.exp(jnp.minimum(h, 0.0)) - 1.0)
    h = h[:, :, :, ::POOL2]
    flat = h.reshape(x.shape[0], -1)
    return jnp.dot(flat, p["wclf"].T, precision=hp) + p["bclf"][None, :]


if __name__ == "__main__":
    # EEGNet(sampling_rate=16, N=4, L=64, C=4, F1=8, D=2, F2=16)
    sampling_rate, N_classes, L, C = 16, 4, 64, 4
    F1, D, F2 = 8, 2, 16
    DF1 = D * F1
    K1 = sampling_rate // 2          # 8
    K2 = sampling_rate // 8          # 2
    B = 200                          # -> 2 grid blocks of 128 (exercises batch padding)
    eps = 1e-5

    key = jax.random.PRNGKey(0)
    ks = jax.random.split(key, 10)

    w1_4d = 0.3 * jax.random.normal(ks[0], (F1, 1, 1, K1), jnp.float32)
    wd_4d = 0.3 * jax.random.normal(ks[1], (DF1, 1, C, 1), jnp.float32)
    wsd_4d = 0.3 * jax.random.normal(ks[2], (DF1, 1, 1, K2), jnp.float32)
    wp_4d = 0.3 * jax.random.normal(ks[3], (F2, DF1, 1, 1), jnp.float32)
    wclf = 0.3 * jax.random.normal(ks[4], (N_classes, F2 * L // 32), jnp.float32)
    bclf = 0.1 * jax.random.normal(ks[5], (N_classes,), jnp.float32)

    def bn_fold(k, ch):
        k1, k2, k3, k4 = jax.random.split(k, 4)
        gamma = 1.0 + 0.1 * jax.random.normal(k1, (ch,), jnp.float32)
        beta = 0.1 * jax.random.normal(k2, (ch,), jnp.float32)
        mean = 0.1 * jax.random.normal(k3, (ch,), jnp.float32)
        var = 0.5 + jax.random.uniform(k4, (ch,), jnp.float32)
        scale = gamma / jnp.sqrt(var + eps)
        return scale, beta - mean * scale

    bn1_scale, bn1_shift = bn_fold(ks[6], F1)
    bn2_scale, bn2_shift = bn_fold(ks[7], DF1)
    bn3_scale, bn3_shift = bn_fold(ks[8], F2)

    x = jax.random.normal(ks[9], (B, C, L), jnp.float32)

    params = dict(
        w1=w1_4d.reshape(F1, K1), w1_4d=w1_4d,
        wd=wd_4d.reshape(DF1, C), wd_4d=wd_4d,
        wsd=wsd_4d.reshape(DF1, K2), wsd_4d=wsd_4d,
        wp=wp_4d.reshape(F2, DF1), wp_4d=wp_4d,
        wclf=wclf, bclf=bclf,
        bn1_scale=bn1_scale, bn1_shift=bn1_shift,
        bn2_scale=bn2_scale, bn2_shift=bn2_shift,
        bn3_scale=bn3_scale, bn3_shift=bn3_shift,
    )

    folded = fold_eegnet_params(params, C, L)   # fold ONCE, reuse for every forward
    y = eegnet_pallas(x, folded)
    y = jax.block_until_ready(y)

    y_ref = eegnet_reference(x, params, F1, DF1)
    np.testing.assert_allclose(np.asarray(y), np.asarray(y_ref), rtol=2e-2, atol=2e-2)
    print("KERNEL_OK")
</pallas_src>

<mosaic_0001>
module attributes {stable_mosaic.version = 11 : i64} {
  func.func @eegnet_kernel(%arg0: i32, %arg1: memref<128x256xf32, #tpu.memory_space<vmem>>, %arg2: memref<256x64xf32, #tpu.memory_space<vmem>>, %arg3: memref<1x64xf32, #tpu.memory_space<vmem>>, %arg4: memref<64x32xf32, #tpu.memory_space<vmem>>, %arg5: memref<1x32xf32, #tpu.memory_space<vmem>>, %arg6: memref<32x4xf32, #tpu.memory_space<vmem>>, %arg7: memref<1x4xf32, #tpu.memory_space<vmem>>, %arg8: memref<128x4xf32, #tpu.memory_space<vmem>>) attributes {dimension_semantics = [#tpu.dimension_semantics<parallel>], iteration_bounds = array<i64: 2>, scalar_prefetch = 0 : i64, scratch_operands = 0 : i64, tpu.core_type = #tpu.core_type<tc>, window_params = [{transform_indices = @transform_0, window_bounds = array<i64: 128, 256>}, {pipeline_mode = #tpu.pipeline_mode<synchronous>, transform_indices = @transform_1, window_bounds = array<i64: 256, 64>}, {pipeline_mode = #tpu.pipeline_mode<synchronous>, transform_indices = @transform_2, window_bounds = array<i64: 1, 64>}, {pipeline_mode = #tpu.pipeline_mode<synchronous>, transform_indices = @transform_3, window_bounds = array<i64: 64, 32>}, {pipeline_mode = #tpu.pipeline_mode<synchronous>, transform_indices = @transform_4, window_bounds = array<i64: 1, 32>}, {pipeline_mode = #tpu.pipeline_mode<synchronous>, transform_indices = @transform_5, window_bounds = array<i64: 32, 4>}, {pipeline_mode = #tpu.pipeline_mode<synchronous>, transform_indices = @transform_6, window_bounds = array<i64: 1, 4>}, {transform_indices = @transform_7, window_bounds = array<i64: 128, 4>}]} {
    %c0 = arith.constant 0 : index
    %c0_0 = arith.constant 0 : index
    %0 = vector.load %arg1[%c0, %c0_0] : memref<128x256xf32, #tpu.memory_space<vmem>>, vector<128x256xf32>
    %c0_1 = arith.constant 0 : index
    %c0_2 = arith.constant 0 : index
    %1 = vector.load %arg2[%c0_1, %c0_2] : memref<256x64xf32, #tpu.memory_space<vmem>>, vector<256x64xf32>
    %cst = arith.constant dense<0.000000e+00> : vector<128x64xf32>
    %2 = tpu.matmul %0, %1, %cst {dimension_numbers = #tpu.dot_dimension_numbers<[1], [0], [0], [1], [0, 0, 1, 1], [], []>} : vector<128x256xf32>, vector<256x64xf32>, vector<128x64xf32> -> vector<128x64xf32>
    %c0_3 = arith.constant 0 : index
    %c0_4 = arith.constant 0 : index
    %3 = vector.load %arg3[%c0_3, %c0_4] : memref<1x64xf32, #tpu.memory_space<vmem>>, vector<1x64xf32>
    %4 = vector.broadcast %3 : vector<1x64xf32> to vector<128x64xf32>
    %5 = arith.addf %2, %4 : vector<128x64xf32>
    %cst_5 = arith.constant 0.000000e+00 : f32
    %6 = vector.broadcast %cst_5 : f32 to vector<128x64xf32>
    %7 = arith.cmpf ogt, %5, %6 : vector<128x64xf32>
    %cst_6 = arith.constant 0.000000e+00 : f32
    %8 = vector.broadcast %cst_6 : f32 to vector<128x64xf32>
    %9 = arith.minimumf %5, %8 : vector<128x64xf32>
    %10 = math.exp %9 : vector<128x64xf32>
    %cst_7 = arith.constant 1.000000e+00 : f32
    %11 = vector.broadcast %cst_7 : f32 to vector<128x64xf32>
    %12 = arith.subf %10, %11 : vector<128x64xf32>
    %13 = arith.select %7, %5, %12 : vector<128x64xi1>, vector<128x64xf32>
    %c0_8 = arith.constant 0 : index
    %c0_9 = arith.constant 0 : index
    %14 = vector.load %arg4[%c0_8, %c0_9] : memref<64x32xf32, #tpu.memory_space<vmem>>, vector<64x32xf32>
    %cst_10 = arith.constant dense<0.000000e+00> : vector<128x32xf32>
    %15 = tpu.matmul %13, %14, %cst_10 {dimension_numbers = #tpu.dot_dimension_numbers<[1], [0], [0], [1], [0, 0, 1, 1], [], []>} : vector<128x64xf32>, vector<64x32xf32>, vector<128x32xf32> -> vector<128x32xf32>
    %c0_11 = arith.constant 0 : index
    %c0_12 = arith.constant 0 : index
    %16 = vector.load %arg5[%c0_11, %c0_12] : memref<1x32xf32, #tpu.memory_space<vmem>>, vector<1x32xf32>
    %17 = vector.broadcast %16 : vector<1x32xf32> to vector<128x32xf32>
    %18 = arith.addf %15, %17 : vector<128x32xf32>
    %cst_13 = arith.constant 0.000000e+00 : f32
    %19 = vector.broadcast %cst_13 : f32 to vector<128x32xf32>
    %20 = arith.cmpf ogt, %18, %19 : vector<128x32xf32>
    %cst_14 = arith.constant 0.000000e+00 : f32
    %21 = vector.broadcast %cst_14 : f32 to vector<128x32xf32>
    %22 = arith.minimumf %18, %21 : vector<128x32xf32>
    %23 = math.exp %22 : vector<128x32xf32>
    %cst_15 = arith.constant 1.000000e+00 : f32
    %24 = vector.broadcast %cst_15 : f32 to vector<128x32xf32>
    %25 = arith.subf %23, %24 : vector<128x32xf32>
    %26 = arith.select %20, %18, %25 : vector<128x32xi1>, vector<128x32xf32>
    %c0_16 = arith.constant 0 : index
    %c0_17 = arith.constant 0 : index
    %27 = vector.load %arg6[%c0_16, %c0_17] : memref<32x4xf32, #tpu.memory_space<vmem>>, vector<32x4xf32>
    %cst_18 = arith.constant dense<0.000000e+00> : vector<128x4xf32>
    %28 = tpu.matmul %26, %27, %cst_18 {dimension_numbers = #tpu.dot_dimension_numbers<[1], [0], [0], [1], [0, 0, 1, 1], [], []>} : vector<128x32xf32>, vector<32x4xf32>, vector<128x4xf32> -> vector<128x4xf32>
    %c0_19 = arith.constant 0 : index
    %c0_20 = arith.constant 0 : index
    %29 = vector.load %arg7[%c0_19, %c0_20] : memref<1x4xf32, #tpu.memory_space<vmem>>, vector<1x4xf32>
    %30 = vector.broadcast %29 : vector<1x4xf32> to vector<128x4xf32>
    %31 = arith.addf %28, %30 : vector<128x4xf32>
    %c0_21 = arith.constant 0 : index
    %c0_22 = arith.constant 0 : index
    %32 = vector.load %arg8[%c0_21, %c0_22] : memref<128x4xf32, #tpu.memory_space<vmem>>, vector<128x4xf32>
    tpu.vector_store %arg8[%c0_21, %c0_22], %31 {strides = array<i32>} : memref<128x4xf32, #tpu.memory_space<vmem>>, vector<128x4xf32>,
    return
  }
  func.func @transform_0(%arg0: i32) -> (i32, i32) {
    %c0_i32 = arith.constant 0 : i32
    %c0_i32_0 = arith.constant 0 : i32
    return %arg0, %c0_i32 : i32, i32
  }
  func.func @transform_1(%arg0: i32) -> (i32, i32) {
    %c0_i32 = arith.constant 0 : i32
    %c0_i32_0 = arith.constant 0 : i32
    %c0_i32_1 = arith.constant 0 : i32
    return %c0_i32, %c0_i32_0 : i32, i32
  }
  func.func @transform_2(%arg0: i32) -> (i32, i32) {
    %c0_i32 = arith.constant 0 : i32
    %c0_i32_0 = arith.constant 0 : i32
    %c0_i32_1 = arith.constant 0 : i32
    return %c0_i32, %c0_i32_0 : i32, i32
  }
  func.func @transform_3(%arg0: i32) -> (i32, i32) {
    %c0_i32 = arith.constant 0 : i32
    %c0_i32_0 = arith.constant 0 : i32
    %c0_i32_1 = arith.constant 0 : i32
    return %c0_i32, %c0_i32_0 : i32, i32
  }
  func.func @transform_4(%arg0: i32) -> (i32, i32) {
    %c0_i32 = arith.constant 0 : i32
    %c0_i32_0 = arith.constant 0 : i32
    %c0_i32_1 = arith.constant 0 : i32
    return %c0_i32, %c0_i32_0 : i32, i32
  }
  func.func @transform_5(%arg0: i32) -> (i32, i32) {
    %c0_i32 = arith.constant 0 : i32
    %c0_i32_0 = arith.constant 0 : i32
    %c0_i32_1 = arith.constant 0 : i32
    return %c0_i32, %c0_i32_0 : i32, i32
  }
  func.func @transform_6(%arg0: i32) -> (i32, i32) {
    %c0_i32 = arith.constant 0 : i32
    %c0_i32_0 = arith.constant 0 : i32
    %c0_i32_1 = arith.constant 0 : i32
    return %c0_i32, %c0_i32_0 : i32, i32
  }
  func.func @transform_7(%arg0: i32) -> (i32, i32) {
    %c0_i32 = arith.constant 0 : i32
    %c0_i32_0 = arith.constant 0 : i32
    return %arg0, %c0_i32 : i32, i32
  }
}

</mosaic_0001>

<bundles_post_ra>
// kernel: tpu_custom_call.1
= control target key start
LH: loop header
LB: loop body
LE: loop exit
PB: predicated region body
PF: predicated region fallthrough
CT: control target
= control target key end

     0   :  { %s1632_s24 = smov 0   ;;  %s1930_s0 = inlined_call_operand.vmem [shape: f32[256,256], index: 0, kind: input, shape index: {}]   ;;  %s1931_s1 = inlined_call_operand.vmem [shape: f32[256,64], index: 1, kind: input, shape index: {}]   ;;  %s1932_s2 = inlined_call_operand.vmem [shape: f32[1,64], index: 2, kind: input, shape index: {}]   ;;  %s1933_s3 = inlined_call_operand.vmem [shape: f32[64,32], index: 3, kind: input, shape index: {}]   ;;  %s1934_s4 = inlined_call_operand.vmem [shape: f32[1,32], index: 4, kind: input, shape index: {}]   ;;  %s1935_s5 = inlined_call_operand.vmem [shape: f32[32,4], index: 5, kind: input, shape index: {}]   ;;  %s1936_s6 = inlined_call_operand.vmem [shape: f32[1,4], index: 6, kind: input, shape index: {}]   ;;  %s1937_s7 = inlined_call_operand.vmem [shape: f32[256,4], index: 7, kind: output, shape index: {}]  }
   0x1 LB: > { %s1180_s25 = sadd.s32 4294967295, %s1590_s24   ;;  %p1184_p0 = scmp.ge.s32.totalorder %s1590_s24, 1  ;;  %s1590_s24 = sphi %s1632_s24, %s17_s24  }
   0x2   : > { %p239_p1 = scmp.lt.s32.totalorder %s1590_s24, 3 }
   0x4   : > { %p240_p2 = pnand %p1184_p0, %p239_p1 }
   0x5   : > { %v333_v0 = vld [vmem:[%s1931_s1 + $0x80] sm:$0xff] (!%p240_p2)  ;;  %v334_v1 = vld [vmem:[%s1931_s1 + $0x88] sm:$0xff] (!%p240_p2)  ;;  %s1185_s9 = sshll.u32 (!%p240_p2), %s1180_s25, 4  ;;  %v335_v5 = vld [vmem:[%s1931_s1 + $0x90] sm:$0xff] (!%p240_p2)  ;;  %vm612_vm0 = vcmask (!%p240_p2), 523264  }
   0x6   : > { %243 = sbr.rel (%p240_p2) target bundleno = 785 (0x311), region = 48  ;;  %v317_v2 = vld [vmem:[%s1931_s1] sm:$0xff] (!%p240_p2)  ;;  %v1456_v3 = vpack.c.bf16 (!%p240_p2), %v334_v1, %v333_v0  ;;  %v318_v4 = vld [vmem:[%s1931_s1 + $0x8] sm:$0xff] (!%p240_p2)  ;;  %v336_v6 = vld [vmem:[%s1931_s1 + $0x98] sm:$0xff] (!%p240_p2)  ;;  %p273_p3 = scmp.lt.s32.totalorder (!%p240_p2), %s1185_s9, 31 }
   0x7   : > { %v1458_v7 = vpack.c.bf16 (!%p240_p2), %v318_v4, %v317_v2  ;;  %v1460_v8 = vpack.c.bf16 (!%p240_p2), %v336_v6, %v335_v5  ;;  %v319_v9 = vld [vmem:[%s1931_s1 + $0x10] sm:$0xff] (!%p240_p2)  ;;  %v320_v10 = vld [vmem:[%s1931_s1 + $0x18] sm:$0xff] (!%p240_p2)  ;;  %v337_v11 = vld [vmem:[%s1931_s1 + $0xa0] sm:$0xff] (!%p240_p2) }
   0x8   : > { %1457 = vmatprep.subr.bf16.mxu0 (!%p240_p2), %v1456_v3  ;;  %v338_v12 = vld [vmem:[%s1931_s1 + $0xa8] sm:$0xff] (!%p240_p2)  ;;  %v1462_v13 = vpack.c.bf16 (!%p240_p2), %v320_v10, %v319_v9  ;;  %v321_v15 = vld [vmem:[%s1931_s1 + $0x20] sm:$0xff] (!%p240_p2)  ;;  %v339_v17 = vld [vmem:[%s1931_s1 + $0xb0] sm:$0xff] (!%p240_p2) }
   0x9   : > { %1459 = vmatpush3.bf16.msra.mxu0 (!%p240_p2), %v1458_v7  ;;  %v1464_v14 = vpack.c.bf16 (!%p240_p2), %v338_v12, %v337_v11  ;;  %v322_v16 = vld [vmem:[%s1931_s1 + $0x28] sm:$0xff] (!%p240_p2)  ;;  %v340_v18 = vld [vmem:[%s1931_s1 + $0xb8] sm:$0xff] (!%p240_p2)  ;;  %v323_v21 = vld [vmem:[%s1931_s1 + $0x30] sm:$0xff] (!%p240_p2) }
   0xa   : > { %1461 = vmatprep.subr.bf16.mxu0 (!%p240_p2), %v1460_v8  ;;  %v1466_v19 = vpack.c.bf16 (!%p240_p2), %v322_v16, %v321_v15  ;;  %v1468_v20 = vpack.c.bf16 (!%p240_p2), %v340_v18, %v339_v17  ;;  %v324_v22 = vld [vmem:[%s1931_s1 + $0x38] sm:$0xff] (!%p240_p2)  ;;  %v341_v23 = vld [vmem:[%s1931_s1 + $0xc0] sm:$0xff] (!%p240_p2)  ;;  %v342_v24 = vld [vmem:[%s1931_s1 + $0xc8] sm:$0xff] (!%p240_p2) }
   0xb   : > { %v1470_v26 = vpack.c.bf16 (!%p240_p2), %v324_v22, %v323_v21  ;;  %v1472_v27 = vpack.c.bf16 (!%p240_p2), %v342_v24, %v341_v23  ;;  %v325_v28 = vld [vmem:[%s1931_s1 + $0x40] sm:$0xff] (!%p240_p2)  ;;  %v326_v29 = vld [vmem:[%s1931_s1 + $0x48] sm:$0xff] (!%p240_p2)  ;;  %v343_v30 = vld [vmem:[%s1931_s1 + $0xd0] sm:$0xff] (!%p240_p2) }
   0xc   : > { %v344_v31 = vld [vmem:[%s1931_s1 + $0xd8] sm:$0xff] (!%p240_p2)  ;;  %v1474_v32 = vpack.c.bf16 (!%p240_p2), %v326_v29, %v325_v28  ;;  %v327_v34 = vld [vmem:[%s1931_s1 + $0x50] sm:$0xff] (!%p240_p2)  ;;  %v345_v36 = vld [vmem:[%s1931_s1 + $0xe0] sm:$0xff] (!%p240_p2) }
   0xd   : > { %s1939_s9 = smov (!%p273_p3, %s1185_s9), 31  ;;  %1463 = vmatpush3.bf16.msra.mxu0 %v1462_v13  ;;  %v1476_v33 = vpack.c.bf16 %v344_v31, %v343_v30  ;;  %v328_v35 = vld [vmem:[%s1931_s1 + $0x58] sm:$0xff]  ;;  %v346_v37 = vld [vmem:[%s1931_s1 + $0xe8] sm:$0xff]  ;;  %v329_v40 = vld [vmem:[%s1931_s1 + $0x60] sm:$0xff] }
   0xe   : > { %s1259_s29 = sshll.u32 %s1939_s9, 4  ;;  %1465 = vmatprep.subr.bf16.mxu0 %v1464_v14  ;;  %v1478_v38 = vpack.c.bf16 %v328_v35, %v327_v34  ;;  %v1480_v39 = vpack.c.bf16 %v346_v37, %v345_v36  ;;  %v330_v41 = vld [vmem:[%s1931_s1 + $0x68] sm:$0xff]  ;;  %v347_v42 = vld [vmem:[%s1931_s1 + $0xf0] sm:$0xff]  ;;  %v348_v43 = vld [vmem:[%s1931_s1 + $0xf8] sm:$0xff]  ;;  %s1189_s18 = sshll.u32 %s1939_s9, 3 }
   0xf   : > { %s1688_s14 = scalar_lea.vmem %s1930_s0, %s1259_s29  ;;  %v1482_v44 = vpack.c.bf16 %v330_v41, %v329_v40  ;;  %v1484_v45 = vpack.c.bf16 %v348_v43, %v347_v42  ;;  %v331_v46 = vld [vmem:[%s1931_s1 + $0x70] sm:$0xff]  ;;  %v332_v47 = vld [vmem:[%s1931_s1 + $0x78] sm:$0xff]  ;;  %v597_v16 = vld [vmem:[%s1933_s3] sm:$0xff]  ;;  %s1893_s22 = scalar_lea.vmem %s1937_s7, %s1189_s18 }
  0x10   : > { %v286_v25 = vld [vmem:[%s1688_s14 + $0x8] sm:$0xff]  ;;  %v1486_v48 = vpack.c.bf16 %v332_v47, %v331_v46  ;;  %v285_v49 = vld [vmem:[%s1688_s14] sm:$0xff]  ;;  %v288_v50 = vld [vmem:[%s1688_s14 + $0x18] sm:$0xff] }
  0x11   : > { %420 = vmatprep.mubr.f32.mxu0 %v286_v25  ;;  %1467 = vmatpush3.bf16.msra.mxu0 %v1466_v19  ;;  %v287_v51 = vld [vmem:[%s1688_s14 + $0x10] sm:$0xff]  ;;  %v290_v52 = vld [vmem:[%s1688_s14 + $0x28] sm:$0xff]  ;;  %v289_v53 = vld [vmem:[%s1688_s14 + $0x20] sm:$0xff] }
  0x12   : > { %1469 = vmatprep.subr.bf16.mxu0 %v1468_v20  ;;  %v292_v54 = vld [vmem:[%s1688_s14 + $0x38] sm:$0xff]  ;;  %v291_v55 = vld [vmem:[%s1688_s14 + $0x30] sm:$0xff]  ;;  %v294_v56 = vld [vmem:[%s1688_s14 + $0x48] sm:$0xff] }
  0x13   : > { %v293_v57 = vld [vmem:[%s1688_s14 + $0x40] sm:$0xff]  ;;  %v296_v58 = vld [vmem:[%s1688_s14 + $0x58] sm:$0xff]  ;;  %v295_v59 = vld [vmem:[%s1688_s14 + $0x50] sm:$0xff] }
  0x14   : > { %v298_v60 = vld [vmem:[%s1688_s14 + $0x68] sm:$0xff]  ;;  %v297_v61 = vld [vmem:[%s1688_s14 + $0x60] sm:$0xff]  ;;  %v300_v62 = vld [vmem:[%s1688_s14 + $0x78] sm:$0xff] }
  0x15   : > { %1471 = vmatpush3.bf16.msra.mxu0 %v1470_v26  ;;  %v299_v63 = vld [vmem:[%s1688_s14 + $0x70] sm:$0xff]  ;;  %v302_v0 = vld [vmem:[%s1688_s14 + $0x88] sm:$0xff]  ;;  %v301_v1 = vld [vmem:[%s1688_s14 + $0x80] sm:$0xff] }
  0x16   : > { %1473 = vmatprep.subr.bf16.mxu0 %v1472_v27  ;;  %v304_v2 = vld [vmem:[%s1688_s14 + $0x98] sm:$0xff]  ;;  %v303_v3 = vld [vmem:[%s1688_s14 + $0x90] sm:$0xff]  ;;  %v306_v4 = vld [vmem:[%s1688_s14 + $0xa8] sm:$0xff] }
  0x17   : > { %v305_v5 = vld [vmem:[%s1688_s14 + $0xa0] sm:$0xff]  ;;  %v308_v6 = vld [vmem:[%s1688_s14 + $0xb8] sm:$0xff]  ;;  %v307_v7 = vld [vmem:[%s1688_s14 + $0xb0] sm:$0xff] }
  0x18   : > { %v310_v8 = vld [vmem:[%s1688_s14 + $0xc8] sm:$0xff]  ;;  %v309_v9 = vld [vmem:[%s1688_s14 + $0xc0] sm:$0xff]  ;;  %v312_v10 = vld [vmem:[%s1688_s14 + $0xd8] sm:$0xff] }
  0x19   : > { %1475 = vmatpush3.bf16.msra.mxu0 %v1474_v32  ;;  %v311_v11 = vld [vmem:[%s1688_s14 + $0xd0] sm:$0xff]  ;;  %v314_v12 = vld [vmem:[%s1688_s14 + $0xe8] sm:$0xff]  ;;  %v313_v13 = vld [vmem:[%s1688_s14 + $0xe0] sm:$0xff] }
  0x1a   : > { %1477 = vmatprep.subr.bf16.mxu0 %v1476_v33  ;;  %v316_v14 = vld [vmem:[%s1688_s14 + $0xf8] sm:$0xff]  ;;  %v315_v15 = vld [vmem:[%s1688_s14 + $0xf0] sm:$0xff]  ;;  %v598_v17 = vld [vmem:[%s1933_s3 + $0x8] sm:$0xff] }
  0x1b   : > { %v1488_v18 = vpack.c.bf16 %v598_v17, %v597_v16  ;;  %v599_v19 = vld [vmem:[%s1933_s3 + $0x10] sm:$0xff]  ;;  %v600_v20 = vld [vmem:[%s1933_s3 + $0x18] sm:$0xff]  ;;  %v601_v22 = vld [vmem:[%s1933_s3 + $0x20] sm:$0xff] }
  0x1c   : > { %v1492_v21 = vpack.c.bf16 %v600_v20, %v599_v19  ;;  %v602_v23 = vld [vmem:[%s1933_s3 + $0x28] sm:$0xff]  ;;  %v603_v25 = vld [vmem:[%s1933_s3 + $0x30] sm:$0xff]  ;;  %v604_v26 = vld [vmem:[%s1933_s3 + $0x38] sm:$0xff] }
  0x1d   : > { %1479 = vmatpush3.bf16.msra.mxu0 %v1478_v38  ;;  %1489 = vmatprep.subr.bf16.mxu1 %v1488_v18  ;;  %v1496_v24 = vpack.c.bf16 %v602_v23, %v601_v22  ;;  %v1500_v27 = vpack.c.bf16 %v604_v26, %v603_v25  ;;  %v1803_v29 = vld [vmem:[%s1932_s2] ss:$0 sm:$0xff] }
  0x1e   : > { %1481 = vmatprep.subr.bf16.mxu0 %v1480_v39  ;;  %1491 = vmatpush3.bf16.msra.mxu1 %v1488_v18 }
  0x1f   : > { %1493 = vmatprep.subr.bf16.mxu1 %v1492_v21 }
  0x21   : > { %1483 = vmatpush3.bf16.msra.mxu0 %v1482_v44 }
  0x22   : > { %1485 = vmatprep.subr.bf16.mxu0 %v1484_v45  ;;  %1495 = vmatpush3.bf16.msra.mxu1 %v1492_v21 }
  0x23   : > { %1497 = vmatprep.subr.bf16.mxu1 %v1496_v24 }
  0x25   : > { %1487 = vmatpush3.bf16.msra.mxu0 %v1486_v48 }
  0x26   : > { %1499 = vmatpush3.bf16.msra.mxu1 %v1496_v24 }
  0x27   : > { %1501 = vmatprep.subr.bf16.mxu1 %v1500_v27 }
  0x28   : > { %421 = vmatmul.mubr.f32.vlgmr.msra.gmra.mrb[0].mxu0 %v285_v49 }
  0x29   : > { %425 = vmatprep.mubr.f32.mxu0 %v288_v50 }
  0x2a   : > { %1503 = vmatpush3.bf16.msra.mxu1 %v1500_v27 }
  0x2c   : > { %426 = vmatmul.mubr.f32.gmra.mrb[2].mxu0 %v287_v51 }
  0x2d   : > { %430 = vmatprep.mubr.f32.mxu0 %v290_v52 }
  0x30   : > { %431 = vmatmul.mubr.f32.gmra.mrb[4].mxu0 %v289_v53 }
  0x31   : > { %435 = vmatprep.mubr.f32.mxu0 %v292_v54 }
  0x34   : > { %436 = vmatmul.mubr.f32.gmra.mrb[6].mxu0 %v291_v55 }
  0x35   : > { %440 = vmatprep.mubr.f32.mxu0 %v294_v56 }
  0x38   : > { %441 = vmatmul.mubr.f32.gmra.mrb[8].mxu0 %v293_v57 }
  0x39   : > { %445 = vmatprep.mubr.f32.mxu0 %v296_v58 }
  0x3c   : > { %446 = vmatmul.mubr.f32.gmra.mrb[10].mxu0 %v295_v59 }
  0x3d   : > { %450 = vmatprep.mubr.f32.mxu0 %v298_v60 }
  0x40   : > { %451 = vmatmul.mubr.f32.gmra.mrb[12].mxu0 %v297_v61 }
  0x41   : > { %455 = vmatprep.mubr.f32.mxu0 %v300_v62 }
  0x44   : > { %456 = vmatmul.mubr.f32.gmra.mrb[14].mxu0 %v299_v63 }
  0x45   : > { %460 = vmatprep.mubr.f32.mxu0 %v302_v0 }
  0x48   : > { %461 = vmatmul.mubr.f32.gmra.mrb[16].mxu0 %v301_v1 }
  0x49   : > { %465 = vmatprep.mubr.f32.mxu0 %v304_v2 }
  0x4c   : > { %466 = vmatmul.mubr.f32.gmra.mrb[18].mxu0 %v303_v3 }
  0x4d   : > { %470 = vmatprep.mubr.f32.mxu0 %v306_v4 }
  0x50   : > { %471 = vmatmul.mubr.f32.gmra.mrb[20].mxu0 %v305_v5 }
  0x51   : > { %475 = vmatprep.mubr.f32.mxu0 %v308_v6 }
  0x54   : > { %476 = vmatmul.mubr.f32.gmra.mrb[22].mxu0 %v307_v7 }
  0x55   : > { %480 = vmatprep.mubr.f32.mxu0 %v310_v8 }
  0x58   : > { %481 = vmatmul.mubr.f32.gmra.mrb[24].mxu0 %v309_v9 }
  0x59   : > { %485 = vmatprep.mubr.f32.mxu0 %v312_v10 }
  0x5c   : > { %486 = vmatmul.mubr.f32.gmra.mrb[26].mxu0 %v311_v11 }
  0x5d   : > { %490 = vmatprep.mubr.f32.mxu0 %v314_v12 }
  0x60   : > { %491 = vmatmul.mubr.f32.gmra.mrb[28].mxu0 %v313_v13 }
  0x61   : > { %495 = vmatprep.mubr.f32.mxu0 %v316_v14 }
  0x64   : > { %496 = vmatmul.mubr.f32.gmra.mrb[30].mxu0 %v315_v15 }
  0xfb   : > { %v1292_v28 = vpop.f32.mrb[0].mxu0 }
  0xfc   : > { %v1293_v30 = vpop.f32.mrb[1].mxu0 }
  0xfd   : > { %v1294_v31 = vadd.f32 %v1293_v30, %v1292_v28 }
  0xff   : > { %v423_v32 = vadd.f32 %v1294_v31, %v1803_v29  ;;  %v1295_v33 = vpop.f32.mrb[2].mxu0 }
 0x100   : > { %v1296_v34 = vpop.f32.mrb[3].mxu0 }
 0x101   : > { %v517_v35 = vmin.f32 %v423_v32, 0.0  ;;  %v1297_v36 = vadd.f32 %v1296_v34, %v1295_v33  ;;  %vm501_vm1 = vcmp.gt.f32.partialorder %v423_v32, 0.0 }
 0x103   : > { %v533_v37 = vmul.f32 1.442695, %v517_v35  ;;  %v428_v38 = vadd.f32 %v1297_v36, %v1803_v29  ;;  %v1298_v39 = vpop.f32.mrb[4].mxu0 }
 0x104   : > { %v1299_v40 = vpop.f32.mrb[5].mxu0 }
 0x105   : > { %v518_v41 = vmin.f32 %v428_v38, 0.0  ;;  %v1300_v42 = vadd.f32 %v1299_v40, %v1298_v39  ;;  %1520 = vpow2.f32 %v533_v37  ;;  %vm502_vm2 = vcmp.gt.f32.partialorder %v428_v38, 0.0 }
 0x107   : > { %v535_v43 = vmul.f32 1.442695, %v518_v41  ;;  %v433_v44 = vadd.f32 %v1300_v42, %v1803_v29  ;;  %v1301_v45 = vpop.f32.mrb[6].mxu0 }
 0x108   : > { %v1302_v46 = vpop.f32.mrb[7].mxu0 }
 0x109   : > { %1522 = vpow2.f32 %v535_v43  ;;  %v519_v47 = vmin.f32 %v433_v44, 0.0  ;;  %v1303_v48 = vadd.f32 %v1302_v46, %v1301_v45  ;;  %vm503_vm3 = vcmp.gt.f32.partialorder %v433_v44, 0.0 }
 0x10b   : > { %v537_v49 = vmul.f32 1.442695, %v519_v47  ;;  %v438_v50 = vadd.f32 %v1303_v48, %v1803_v29  ;;  %v1304_v51 = vpop.f32.mrb[8].mxu0 }
 0x10c   : > { %v1305_v52 = vpop.f32.mrb[9].mxu0 }
 0x10d   : > { %1524 = vpow2.f32 %v537_v49  ;;  %v520_v53 = vmin.f32 %v438_v50, 0.0  ;;  %v1306_v54 = vadd.f32 %v1305_v52, %v1304_v51  ;;  %vm504_vm4 = vcmp.gt.f32.partialorder %v438_v50, 0.0 }
 0x10f   : > { %v1521_v55 = vpop.eup %1520  ;;  %v539_v56 = vmul.f32 1.442695, %v520_v53  ;;  %v443_v57 = vadd.f32 %v1306_v54, %v1803_v29  ;;  %v1307_v58 = vpop.f32.mrb[10].mxu0 }
 0x110   : > { %v1308_v59 = vpop.f32.mrb[11].mxu0  ;;  %v1191_v60 = vadd.f32 -1.0, %v1521_v55 }
 0x111   : > { %1526 = vpow2.f32 %v539_v56  ;;  %v521_v61 = vmin.f32 %v443_v57, 0.0  ;;  %v1309_v62 = vadd.f32 %v1308_v59, %v1307_v58  ;;  %vm505_vm5 = vcmp.gt.f32.partialorder %v443_v57, 0.0 }
 0x112   : > { %v581_v63 = vsel %vm501_vm1, %v423_v32, %v1191_v60 }
 0x113   : > { %v1523_v0 = vpop.eup %1522  ;;  %v541_v1 = vmul.f32 1.442695, %v521_v61  ;;  %v448_v2 = vadd.f32 %v1309_v62, %v1803_v29  ;;  %v1310_v3 = vpop.f32.mrb[12].mxu0  ;;  %1400 = vmatprep.mubr.msk.f32.mxu1 %vm612_vm0, %v581_v63 }
 0x114   : > { %v1311_v4 = vpop.f32.mrb[13].mxu0  ;;  %v1192_v5 = vadd.f32 -1.0, %v1523_v0 }
 0x115   : > { %1528 = vpow2.f32 %v541_v1  ;;  %v522_v6 = vmin.f32 %v448_v2, 0.0  ;;  %v1312_v7 = vadd.f32 %v1311_v4, %v1310_v3  ;;  %vm506_vm6 = vcmp.gt.f32.partialorder %v448_v2, 0.0 }
 0x116   : > { %v582_v8 = vsel %vm502_vm2, %v428_v38, %v1192_v5 }
 0x117   : > { %v1525_v9 = vpop.eup %1524  ;;  %v543_v10 = vmul.f32 1.442695, %v522_v6  ;;  %v453_v11 = vadd.f32 %v1312_v7, %v1803_v29  ;;  %v1313_v12 = vpop.f32.mrb[14].mxu0  ;;  %1401 = vmatmul.mubr.msk.f32.vlgmr.msra.gmra.mrb[0].mxu1 %vm612_vm0, %v582_v8 }
 0x118   : > { %v1314_v13 = vpop.f32.mrb[15].mxu0  ;;  %v1193_v14 = vadd.f32 -1.0, %v1525_v9 }
 0x119   : > { %1530 = vpow2.f32 %v543_v10  ;;  %v523_v15 = vmin.f32 %v453_v11, 0.0  ;;  %v1315_v16 = vadd.f32 %v1314_v13, %v1313_v12  ;;  %vm507_vm7 = vcmp.gt.f32.partialorder %v453_v11, 0.0 }
 0x11a   : > { %v583_v17 = vsel %vm503_vm3, %v433_v44, %v1193_v14 }
 0x11b   : > { %v1527_v18 = vpop.eup %1526  ;;  %v545_v19 = vmul.f32 1.442695, %v523_v15  ;;  %v458_v20 = vadd.f32 %v1315_v16, %v1803_v29  ;;  %v1316_v21 = vpop.f32.mrb[16].mxu0  ;;  %1403 = vmatprep.mubr.msk.f32.mxu1 %vm612_vm0, %v583_v17 }
 0x11c   : > { %v1317_v22 = vpop.f32.mrb[17].mxu0  ;;  %v1194_v23 = vadd.f32 -1.0, %v1527_v18 }
 0x11d   : > { %1532 = vpow2.f32 %v545_v19  ;;  %v524_v24 = vmin.f32 %v458_v20, 0.0  ;;  %v1318_v25 = vadd.f32 %v1317_v22, %v1316_v21  ;;  %vm508_vm8 = vcmp.gt.f32.partialorder %v458_v20, 0.0 }
 0x11e   : > { %v584_v26 = vsel %vm504_vm4, %v438_v50, %v1194_v23 }
 0x11f   : > { %v1529_v27 = vpop.eup %1528  ;;  %v547_v28 = vmul.f32 1.442695, %v524_v24  ;;  %v463_v30 = vadd.f32 %v1318_v25, %v1803_v29  ;;  %v1319_v31 = vpop.f32.mrb[18].mxu0  ;;  %1404 = vmatmul.mubr.msk.f32.gmra.mrb[2].mxu1 %vm612_vm0, %v584_v26 }
 0x120   : > { %v1320_v32 = vpop.f32.mrb[19].mxu0  ;;  %v1195_v33 = vadd.f32 -1.0, %v1529_v27 }
 0x121   : > { %1534 = vpow2.f32 %v547_v28  ;;  %v525_v34 = vmin.f32 %v463_v30, 0.0  ;;  %v1321_v35 = vadd.f32 %v1320_v32, %v1319_v31  ;;  %vm509_vm9 = vcmp.gt.f32.partialorder %v463_v30, 0.0 }
 0x122   : > { %v585_v36 = vsel %vm505_vm5, %v443_v57, %v1195_v33 }
 0x123   : > { %v1531_v37 = vpop.eup %1530  ;;  %v549_v38 = vmul.f32 1.442695, %v525_v34  ;;  %v468_v39 = vadd.f32 %v1321_v35, %v1803_v29  ;;  %v1322_v40 = vpop.f32.mrb[20].mxu0  ;;  %1406 = vmatprep.mubr.msk.f32.mxu1 %vm612_vm0, %v585_v36 }
 0x124   : > { %v1323_v41 = vpop.f32.mrb[21].mxu0  ;;  %v1196_v42 = vadd.f32 -1.0, %v1531_v37 }
 0x125   : > { %1536 = vpow2.f32 %v549_v38  ;;  %v526_v43 = vmin.f32 %v468_v39, 0.0  ;;  %v1324_v44 = vadd.f32 %v1323_v41, %v1322_v40  ;;  %vm510_vm10 = vcmp.gt.f32.partialorder %v468_v39, 0.0 }
 0x126   : > { %v586_v45 = vsel %vm506_vm6, %v448_v2, %v1196_v42 }
 0x127   : > { %v1533_v46 = vpop.eup %1532  ;;  %v551_v47 = vmul.f32 1.442695, %v526_v43  ;;  %v473_v48 = vadd.f32 %v1324_v44, %v1803_v29  ;;  %v1325_v49 = vpop.f32.mrb[22].mxu0  ;;  %1407 = vmatmul.mubr.msk.f32.gmra.mrb[4].mxu1 %vm612_vm0, %v586_v45 }
 0x128   : > { %v1326_v50 = vpop.f32.mrb[23].mxu0  ;;  %v1197_v51 = vadd.f32 -1.0, %v1533_v46  ;;  %v902_v46 = vld [vmem:[%s1935_s5] sm:$0xff] }
 0x129   : > { %1538 = vpow2.f32 %v551_v47  ;;  %v527_v52 = vmin.f32 %v473_v48, 0.0  ;;  %v1327_v53 = vadd.f32 %v1326_v50, %v1325_v49  ;;  %vm511_vm11 = vcmp.gt.f32.partialorder %v473_v48, 0.0  ;;  %v903_v47 = vld [vmem:[%s1935_s5 + $0x8] sm:$0xff]  ;;  %v904_v49 = vld [vmem:[%s1935_s5 + $0x10] sm:$0xff]  ;;  %v905_v50 = vld [vmem:[%s1935_s5 + $0x18] sm:$0xff] }
 0x12a   : > { %v587_v54 = vsel %vm507_vm7, %v453_v11, %v1197_v51  ;;  %v1508_v51 = vpack.c.bf16 %v905_v50, %v904_v49 }
 0x12b   : > { %v1535_v55 = vpop.eup %1534  ;;  %v553_v56 = vmul.f32 1.442695, %v527_v52  ;;  %v478_v57 = vadd.f32 %v1327_v53, %v1803_v29  ;;  %v1328_v58 = vpop.f32.mrb[24].mxu0  ;;  %1409 = vmatprep.mubr.msk.f32.mxu1 %vm612_vm0, %v587_v54  ;;  %v1852_v52 = vld [vmem:[%s1934_s4] ss:$0 sm:$0xff] }
 0x12c   : > { %v1329_v59 = vpop.f32.mrb[25].mxu0  ;;  %v1198_v60 = vadd.f32 -1.0, %v1535_v55 }
 0x12d   : > { %1540 = vpow2.f32 %v553_v56  ;;  %v528_v61 = vmin.f32 %v478_v57, 0.0  ;;  %v1330_v62 = vadd.f32 %v1329_v59, %v1328_v58  ;;  %vm512_vm12 = vcmp.gt.f32.partialorder %v478_v57, 0.0 }
 0x12e   : > { %v588_v63 = vsel %vm508_vm8, %v458_v20, %v1198_v60 }
 0x12f   : > { %v1537_v0 = vpop.eup %1536  ;;  %v555_v1 = vmul.f32 1.442695, %v528_v61  ;;  %v483_v2 = vadd.f32 %v1330_v62, %v1803_v29  ;;  %v1331_v3 = vpop.f32.mrb[26].mxu0  ;;  %1410 = vmatmul.mubr.msk.f32.gmra.mrb[6].mxu1 %vm612_vm0, %v588_v63 }
 0x130   : > { %v1332_v4 = vpop.f32.mrb[27].mxu0  ;;  %v1199_v5 = vadd.f32 -1.0, %v1537_v0 }
 0x131   : > { %1542 = vpow2.f32 %v555_v1  ;;  %v529_v6 = vmin.f32 %v483_v2, 0.0  ;;  %v1333_v7 = vadd.f32 %v1332_v4, %v1331_v3  ;;  %vm513_vm13 = vcmp.gt.f32.partialorder %v483_v2, 0.0 }
 0x132   : > { %v589_v8 = vsel %vm509_vm9, %v463_v30, %v1199_v5 }
 0x133   : > { %v1539_v9 = vpop.eup %1538  ;;  %v557_v10 = vmul.f32 1.442695, %v529_v6  ;;  %v488_v11 = vadd.f32 %v1333_v7, %v1803_v29  ;;  %v1334_v12 = vpop.f32.mrb[28].mxu0  ;;  %1412 = vmatprep.mubr.msk.f32.mxu1 %vm612_vm0, %v589_v8 }
 0x134   : > { %v1335_v13 = vpop.f32.mrb[29].mxu0  ;;  %v1200_v14 = vadd.f32 -1.0, %v1539_v9 }
 0x135   : > { %1544 = vpow2.f32 %v557_v10  ;;  %v530_v15 = vmin.f32 %v488_v11, 0.0  ;;  %v1336_v16 = vadd.f32 %v1335_v13, %v1334_v12  ;;  %vm514_vm14 = vcmp.gt.f32.partialorder %v488_v11, 0.0 }
 0x136   : > { %v590_v17 = vsel %vm510_vm10, %v468_v39, %v1200_v14 }
 0x137   : > { %v1541_v18 = vpop.eup %1540  ;;  %v559_v19 = vmul.f32 1.442695, %v530_v15  ;;  %v493_v20 = vadd.f32 %v1336_v16, %v1803_v29  ;;  %v1337_v21 = vpop.f32.mrb[30].mxu0  ;;  %1413 = vmatmul.mubr.msk.f32.gmra.mrb[8].mxu1 %vm612_vm0, %v590_v17 }
 0x138   : > { %v1338_v22 = vpop.f32.mrb[31].mxu0  ;;  %v1201_v23 = vadd.f32 -1.0, %v1541_v18 }
 0x139   : > { %1546 = vpow2.f32 %v559_v19  ;;  %v531_v24 = vmin.f32 %v493_v20, 0.0  ;;  %v1339_v25 = vadd.f32 %v1338_v22, %v1337_v21  ;;  %vm515_vm15 = vcmp.gt.f32.partialorder %v493_v20, 0.0 }
 0x13a   : > { %v591_v26 = vsel %vm511_vm11, %v473_v48, %v1201_v23  ;;  %v1504_v48 = vpack.c.bf16 %v903_v47, %v902_v46 }
 0x13b   : > { %v1543_v27 = vpop.eup %1542  ;;  %v561_v28 = vmul.f32 1.442695, %v531_v24  ;;  %v498_v30 = vadd.f32 %v1339_v25, %v1803_v29  ;;  %1415 = vmatprep.mubr.msk.f32.mxu1 %vm612_vm0, %v591_v26 }
 0x13c   : > { %v1202_v31 = vadd.f32 -1.0, %v1543_v27  ;;  %1505 = vmatprep.subr.bf16.mxu1 %v1504_v48 }
 0x13d   : > { %1548 = vpow2.f32 %v561_v28  ;;  %v532_v32 = vmin.f32 %v498_v30, 0.0  ;;  %vm516_vm1 = vcmp.gt.f32.partialorder %v498_v30, 0.0  ;;  %1507 = vmatpush3.bf16.msra.mxu1 %v1504_v48 }
 0x13e   : > { %v592_v33 = vsel %vm512_vm12, %v478_v57, %v1202_v31  ;;  %1509 = vmatprep.subr.bf16.mxu1 %v1508_v51 }
 0x13f   : > { %v1545_v34 = vpop.eup %1544  ;;  %v563_v35 = vmul.f32 1.442695, %v532_v32  ;;  %1416 = vmatmul.mubr.msk.f32.gmra.mrb[10].mxu1 %vm612_vm0, %v592_v33 }
 0x140   : > { %v1203_v36 = vadd.f32 -1.0, %v1545_v34 }
 0x141   : > { %1550 = vpow2.f32 %v563_v35  ;;  %1511 = vmatpush3.bf16.msra.mxu1 %v1508_v51 }
 0x142   : > { %v593_v37 = vsel %vm513_vm13, %v483_v2, %v1203_v36 }
 0x143   : > { %v1547_v38 = vpop.eup %1546  ;;  %1418 = vmatprep.mubr.msk.f32.mxu1 %vm612_vm0, %v593_v37 }
 0x144   : > { %v1204_v39 = vadd.f32 -1.0, %v1547_v38 }
 0x146   : > { %v594_v29 = vsel %vm514_vm14, %v488_v11, %v1204_v39 }
 0x147   : > { %v1549_v40 = vpop.eup %1548  ;;  %1419 = vmatmul.mubr.msk.f32.gmra.mrb[12].mxu1 %vm612_vm0, %v594_v29 }
 0x148   : > { %v1205_v41 = vadd.f32 -1.0, %v1549_v40 }
 0x14a   : > { %v595_v42 = vsel %vm515_vm15, %v493_v20, %v1205_v41 }
 0x14b   : > { %v1551_v43 = vpop.eup %1550  ;;  %1421 = vmatprep.mubr.msk.f32.mxu1 %vm612_vm0, %v595_v42 }
 0x14c   : > { %v1206_v44 = vadd.f32 -1.0, %v1551_v43 }
 0x14e   : > { %v596_v45 = vsel %vm516_vm1, %v498_v30, %v1206_v44 }
 0x14f   : > { %1422 = vmatmul.mubr.msk.f32.gmra.mrb[14].mxu1 %vm612_vm0, %v596_v45  ;;  %vm913_vm0 = vcmask 261120  }
 0x1ea   : > { %v1402_v53 = vpop.f32.mrb[0].mxu1 }
 0x1eb   : > { %v733_v54 = vadd.f32 %v1402_v53, %v1852_v52  ;;  %v727_v55 = vpop.f32.mrb[1].mxu1 }
 0x1ec   : > { %v728_v56 = vadd.f32 %v1852_v52, %v727_v55 }
 0x1ed   : > { %v823_v57 = vmin.f32 %v733_v54, 0.0  ;;  %vm807_vm3 = vcmp.gt.f32.partialorder %v733_v54, 0.0 }
 0x1ee   : > { %v822_v58 = vmin.f32 %v728_v56, 0.0  ;;  %vm806_vm2 = vcmp.gt.f32.partialorder %v728_v56, 0.0 }
 0x1ef   : > { %v840_v59 = vmul.f32 1.442695, %v823_v57 }
 0x1f0   : > { %v838_v60 = vmul.f32 1.442695, %v822_v58 }
 0x1f1   : > { %1552 = vpow2.f32 %v840_v59 }
 0x1f2   : > { %1554 = vpow2.f32 %v838_v60  ;;  %v1405_v61 = vpop.f32.mrb[2].mxu1 }
 0x1f3   : > { %v743_v62 = vadd.f32 %v1405_v61, %v1852_v52  ;;  %v737_v63 = vpop.f32.mrb[3].mxu1 }
 0x1f4   : > { %v738_v0 = vadd.f32 %v1852_v52, %v737_v63 }
 0x1f5   : > { %v825_v1 = vmin.f32 %v743_v62, 0.0  ;;  %vm809_vm5 = vcmp.gt.f32.partialorder %v743_v62, 0.0 }
 0x1f6   : > { %v824_v2 = vmin.f32 %v738_v0, 0.0  ;;  %vm808_vm4 = vcmp.gt.f32.partialorder %v738_v0, 0.0 }
 0x1f7   : > { %v844_v3 = vmul.f32 1.442695, %v825_v1 }
 0x1f8   : > { %v842_v4 = vmul.f32 1.442695, %v824_v2 }
 0x1f9   : > { %1556 = vpow2.f32 %v844_v3 }
 0x1fa   : > { %1558 = vpow2.f32 %v842_v4  ;;  %v1408_v5 = vpop.f32.mrb[4].mxu1 }
 0x1fb   : > { %v1553_v6 = vpop.eup %1552  ;;  %v753_v7 = vadd.f32 %v1408_v5, %v1852_v52  ;;  %v747_v8 = vpop.f32.mrb[5].mxu1 }
 0x1fc   : > { %v1555_v9 = vpop.eup %1554  ;;  %v1225_v10 = vadd.f32 -1.0, %v1553_v6  ;;  %v748_v11 = vadd.f32 %v1852_v52, %v747_v8 }
 0x1fd   : > { %v827_v12 = vmin.f32 %v753_v7, 0.0  ;;  %v1224_v13 = vadd.f32 -1.0, %v1555_v9  ;;  %vm811_vm7 = vcmp.gt.f32.partialorder %v753_v7, 0.0 }
 0x1fe   : > { %v826_v14 = vmin.f32 %v748_v11, 0.0  ;;  %v887_v17 = vsel %vm807_vm3, %v733_v54, %v1225_v10  ;;  %vm810_vm6 = vcmp.gt.f32.partialorder %v748_v11, 0.0  ;;  %vm1107_vm3 = vcmask 31744  }
 0x1ff   : > { %v848_v15 = vmul.f32 1.442695, %v827_v12  ;;  %v886_v16 = vsel %vm806_vm2, %v728_v56, %v1224_v13 }
 0x200   : > { %v846_v18 = vmul.f32 1.442695, %v826_v14  ;;  %1432 = vmatprep.mubr.msk.f32.mxu1 %vm913_vm0, %v886_v16 }
 0x201   : > { %1560 = vpow2.f32 %v848_v15  ;;  %1433 = vmatmul.mubr.msk.f32.vlgmr.msra.gmra.mrb[16].mxu1 %vm913_vm0, %v887_v17 }
 0x202   : > { %1562 = vpow2.f32 %v846_v18  ;;  %v1411_v19 = vpop.f32.mrb[6].mxu1 }
 0x203   : > { %v1557_v20 = vpop.eup %1556  ;;  %v763_v21 = vadd.f32 %v1411_v19, %v1852_v52  ;;  %v757_v22 = vpop.f32.mrb[7].mxu1 }
 0x204   : > { %v1559_v23 = vpop.eup %1558  ;;  %v758_v24 = vadd.f32 %v1852_v52, %v757_v22  ;;  %v1227_v25 = vadd.f32 -1.0, %v1557_v20 }
 0x205   : > { %v829_v26 = vmin.f32 %v763_v21, 0.0  ;;  %v1226_v27 = vadd.f32 -1.0, %v1559_v23  ;;  %vm813_vm9 = vcmp.gt.f32.partialorder %v763_v21, 0.0 }
 0x206   : > { %v828_v28 = vmin.f32 %v758_v24, 0.0  ;;  %v889_v33 = vsel %vm809_vm5, %v743_v62, %v1227_v25  ;;  %vm812_vm8 = vcmp.gt.f32.partialorder %v758_v24, 0.0 }
 0x207   : > { %v852_v30 = vmul.f32 1.442695, %v829_v26  ;;  %v888_v31 = vsel %vm808_vm4, %v738_v0, %v1226_v27 }
 0x208   : > { %v850_v32 = vmul.f32 1.442695, %v828_v28  ;;  %1435 = vmatprep.mubr.msk.f32.mxu1 %vm913_vm0, %v888_v31 }
 0x209   : > { %1564 = vpow2.f32 %v852_v30  ;;  %1436 = vmatmul.mubr.msk.f32.gmra.mrb[18].mxu1 %vm913_vm0, %v889_v33 }
 0x20a   : > { %1566 = vpow2.f32 %v850_v32  ;;  %v1414_v34 = vpop.f32.mrb[8].mxu1 }
 0x20b   : > { %v1561_v35 = vpop.eup %1560  ;;  %v773_v36 = vadd.f32 %v1414_v34, %v1852_v52  ;;  %v767_v37 = vpop.f32.mrb[9].mxu1 }
 0x20c   : > { %v1563_v38 = vpop.eup %1562  ;;  %v768_v39 = vadd.f32 %v1852_v52, %v767_v37  ;;  %v1229_v29 = vadd.f32 -1.0, %v1561_v35 }
 0x20d   : > { %v831_v40 = vmin.f32 %v773_v36, 0.0  ;;  %v1228_v41 = vadd.f32 -1.0, %v1563_v38  ;;  %vm815_vm11 = vcmp.gt.f32.partialorder %v773_v36, 0.0  ;;  %v1240_v38 = vld [vmem:[%s1936_s6] ss:$0 sm:$0xff] }
 0x20e   : > { %v830_v42 = vmin.f32 %v768_v39, 0.0  ;;  %v891_v46 = vsel %vm811_vm7, %v753_v7, %v1229_v29  ;;  %vm814_vm10 = vcmp.gt.f32.partialorder %v768_v39, 0.0 }
 0x20f   : > { %v856_v43 = vmul.f32 1.442695, %v831_v40  ;;  %v890_v44 = vsel %vm810_vm6, %v748_v11, %v1228_v41 }
 0x210   : > { %v854_v45 = vmul.f32 1.442695, %v830_v42  ;;  %1438 = vmatprep.mubr.msk.f32.mxu1 %vm913_vm0, %v890_v44 }
 0x211   : > { %1568 = vpow2.f32 %v856_v43  ;;  %1439 = vmatmul.mubr.msk.f32.gmra.mrb[20].mxu1 %vm913_vm0, %v891_v46 }
 0x212   : > { %1570 = vpow2.f32 %v854_v45  ;;  %v1417_v47 = vpop.f32.mrb[10].mxu1 }
 0x213   : > { %v1565_v48 = vpop.eup %1564  ;;  %v783_v49 = vadd.f32 %v1417_v47, %v1852_v52  ;;  %v777_v50 = vpop.f32.mrb[11].mxu1 }
 0x214   : > { %v1567_v51 = vpop.eup %1566  ;;  %v778_v53 = vadd.f32 %v1852_v52, %v777_v50  ;;  %v1231_v54 = vadd.f32 -1.0, %v1565_v48 }
 0x215   : > { %v833_v55 = vmin.f32 %v783_v49, 0.0  ;;  %v1230_v56 = vadd.f32 -1.0, %v1567_v51  ;;  %vm817_vm13 = vcmp.gt.f32.partialorder %v783_v49, 0.0 }
 0x216   : > { %v832_v57 = vmin.f32 %v778_v53, 0.0  ;;  %v893_v61 = vsel %vm813_vm9, %v763_v21, %v1231_v54  ;;  %vm816_vm12 = vcmp.gt.f32.partialorder %v778_v53, 0.0 }
 0x217   : > { %v860_v58 = vmul.f32 1.442695, %v833_v55  ;;  %v892_v59 = vsel %vm812_vm8, %v758_v24, %v1230_v56 }
 0x218   : > { %v858_v60 = vmul.f32 1.442695, %v832_v57  ;;  %1441 = vmatprep.mubr.msk.f32.mxu1 %vm913_vm0, %v892_v59 }
 0x219   : > { %1572 = vpow2.f32 %v860_v58  ;;  %1442 = vmatmul.mubr.msk.f32.gmra.mrb[22].mxu1 %vm913_vm0, %v893_v61 }
 0x21a   : > { %1574 = vpow2.f32 %v858_v60  ;;  %v1420_v62 = vpop.f32.mrb[12].mxu1 }
 0x21b   : > { %v1569_v63 = vpop.eup %1568  ;;  %v793_v0 = vadd.f32 %v1420_v62, %v1852_v52  ;;  %v787_v1 = vpop.f32.mrb[13].mxu1 }
 0x21c   : > { %v1571_v2 = vpop.eup %1570  ;;  %v788_v3 = vadd.f32 %v1852_v52, %v787_v1  ;;  %v1233_v4 = vadd.f32 -1.0, %v1569_v63 }
 0x21d   : > { %v835_v5 = vmin.f32 %v793_v0, 0.0  ;;  %v1232_v6 = vadd.f32 -1.0, %v1571_v2  ;;  %vm819_vm15 = vcmp.gt.f32.partialorder %v793_v0, 0.0 }
 0x21e   : > { %v834_v7 = vmin.f32 %v788_v3, 0.0  ;;  %v895_v11 = vsel %vm815_vm11, %v773_v36, %v1233_v4  ;;  %vm818_vm14 = vcmp.gt.f32.partialorder %v788_v3, 0.0 }
 0x21f   : > { %v864_v8 = vmul.f32 1.442695, %v835_v5  ;;  %v894_v9 = vsel %vm814_vm10, %v768_v39, %v1232_v6 }
 0x220   : > { %v862_v10 = vmul.f32 1.442695, %v834_v7  ;;  %1444 = vmatprep.mubr.msk.f32.mxu1 %vm913_vm0, %v894_v9 }
 0x221   : > { %1576 = vpow2.f32 %v864_v8  ;;  %1445 = vmatmul.mubr.msk.f32.gmra.mrb[24].mxu1 %vm913_vm0, %v895_v11 }
 0x222   : > { %1578 = vpow2.f32 %v862_v10  ;;  %v1423_v12 = vpop.f32.mrb[14].mxu1 }
 0x223   : > { %v1573_v13 = vpop.eup %1572  ;;  %v803_v14 = vadd.f32 %v1423_v12, %v1852_v52  ;;  %v797_v15 = vpop.f32.mrb[15].mxu1 }
 0x224   : > { %v1575_v16 = vpop.eup %1574  ;;  %v798_v17 = vadd.f32 %v1852_v52, %v797_v15  ;;  %v1235_v18 = vadd.f32 -1.0, %v1573_v13 }
 0x225   : > { %v837_v19 = vmin.f32 %v803_v14, 0.0  ;;  %v1234_v20 = vadd.f32 -1.0, %v1575_v16  ;;  %vm821_vm2 = vcmp.gt.f32.partialorder %v803_v14, 0.0 }
 0x226   : > { %v836_v21 = vmin.f32 %v798_v17, 0.0  ;;  %v897_v25 = vsel %vm817_vm13, %v783_v49, %v1235_v18  ;;  %vm820_vm1 = vcmp.gt.f32.partialorder %v798_v17, 0.0 }
 0x227   : > { %v868_v22 = vmul.f32 1.442695, %v837_v19  ;;  %v896_v23 = vsel %vm816_vm12, %v778_v53, %v1234_v20 }
 0x228   : > { %v866_v24 = vmul.f32 1.442695, %v836_v21  ;;  %1447 = vmatprep.mubr.msk.f32.mxu1 %vm913_vm0, %v896_v23 }
 0x229   : > { %1580 = vpow2.f32 %v868_v22  ;;  %1448 = vmatmul.mubr.msk.f32.gmra.mrb[26].mxu1 %vm913_vm0, %v897_v25 }
 0x22a   : > { %1582 = vpow2.f32 %v866_v24 }
 0x22b   : > { %v1577_v26 = vpop.eup %1576 }
 0x22c   : > { %v1579_v27 = vpop.eup %1578  ;;  %v1237_v28 = vadd.f32 -1.0, %v1577_v26 }
 0x22d   : > { %v1236_v52 = vadd.f32 -1.0, %v1579_v27 }
 0x22e   : > { %v899_v31 = vsel %vm819_vm15, %v793_v0, %v1237_v28 }
 0x22f   : > { %v898_v30 = vsel %vm818_vm14, %v788_v3, %v1236_v52 }
 0x230   : > { %1450 = vmatprep.mubr.msk.f32.mxu1 %vm913_vm0, %v898_v30 }
 0x231   : > { %1451 = vmatmul.mubr.msk.f32.gmra.mrb[28].mxu1 %vm913_vm0, %v899_v31 }
 0x233   : > { %v1581_v32 = vpop.eup %1580 }
 0x234   : > { %v1583_v33 = vpop.eup %1582  ;;  %v1239_v34 = vadd.f32 -1.0, %v1581_v32 }
 0x235   : > { %v1238_v35 = vadd.f32 -1.0, %v1583_v33 }
 0x236   : > { %v901_v37 = vsel %vm821_vm2, %v803_v14, %v1239_v34 }
 0x237   : > { %v900_v36 = vsel %vm820_vm1, %v798_v17, %v1238_v35 }
 0x238   : > { %1453 = vmatprep.mubr.msk.f32.mxu1 %vm913_vm0, %v900_v36 }
 0x239   : > { %1454 = vmatmul.mubr.msk.f32.gmra.mrb[30].mxu1 %vm913_vm0, %v901_v37 }
 0x2d4   : > { %v1434_v39 = vpop.f32.mrb[16].mxu1 }
 0x2d5   : > { %v1034_v29 = vadd.f32 %v1434_v39, %v1240_v38  ;;  %v1028_v40 = vpop.f32.mrb[17].mxu1 }
 0x2d6   : > { %v1029_v41 = vadd.f32 %v1240_v38, %v1028_v40 }
 0x2d7   : > { %1109 = vst.msk [vmem:[%s1893_s22 + $0x8] sm:$0xff] %vm1107_vm3, %v1034_v29 }
 0x2d8   : > { %1108 = vst.msk [vmem:[%s1893_s22] sm:$0xff] %vm1107_vm3, %v1029_v41 }
 0x2dc   : > { %v1437_v42 = vpop.f32.mrb[18].mxu1 }
 0x2dd   : > { %v1044_v43 = vadd.f32 %v1437_v42, %v1240_v38  ;;  %v1038_v44 = vpop.f32.mrb[19].mxu1 }
 0x2de   : > { %v1039_v45 = vadd.f32 %v1240_v38, %v1038_v44 }
 0x2df   : > { %1111 = vst.msk [vmem:[%s1893_s22 + $0x18] sm:$0xff] %vm1107_vm3, %v1044_v43 }
 0x2e0   : > { %1110 = vst.msk [vmem:[%s1893_s22 + $0x10] sm:$0xff] %vm1107_vm3, %v1039_v45 }
 0x2e4   : > { %v1440_v46 = vpop.f32.mrb[20].mxu1 }
 0x2e5   : > { %v1054_v47 = vadd.f32 %v1440_v46, %v1240_v38  ;;  %v1048_v48 = vpop.f32.mrb[21].mxu1 }
 0x2e6   : > { %v1049_v49 = vadd.f32 %v1240_v38, %v1048_v48 }
 0x2e7   : > { %1113 = vst.msk [vmem:[%s1893_s22 + $0x28] sm:$0xff] %vm1107_vm3, %v1054_v47 }
 0x2e8   : > { %1112 = vst.msk [vmem:[%s1893_s22 + $0x20] sm:$0xff] %vm1107_vm3, %v1049_v49 }
 0x2ec   : > { %v1443_v50 = vpop.f32.mrb[22].mxu1 }
 0x2ed   : > { %v1064_v51 = vadd.f32 %v1443_v50, %v1240_v38  ;;  %v1058_v53 = vpop.f32.mrb[23].mxu1 }
 0x2ee   : > { %v1059_v54 = vadd.f32 %v1240_v38, %v1058_v53 }
 0x2ef   : > { %1115 = vst.msk [vmem:[%s1893_s22 + $0x38] sm:$0xff] %vm1107_vm3, %v1064_v51 }
 0x2f0   : > { %1114 = vst.msk [vmem:[%s1893_s22 + $0x30] sm:$0xff] %vm1107_vm3, %v1059_v54 }
 0x2f4   : > { %v1446_v55 = vpop.f32.mrb[24].mxu1 }
 0x2f5   : > { %v1074_v56 = vadd.f32 %v1446_v55, %v1240_v38  ;;  %v1068_v57 = vpop.f32.mrb[25].mxu1 }
 0x2f6   : > { %v1069_v58 = vadd.f32 %v1240_v38, %v1068_v57 }
 0x2f7   : > { %1117 = vst.msk [vmem:[%s1893_s22 + $0x48] sm:$0xff] %vm1107_vm3, %v1074_v56 }
 0x2f8   : > { %1116 = vst.msk [vmem:[%s1893_s22 + $0x40] sm:$0xff] %vm1107_vm3, %v1069_v58 }
 0x2fc   : > { %v1449_v59 = vpop.f32.mrb[26].mxu1 }
 0x2fd   : > { %v1084_v60 = vadd.f32 %v1449_v59, %v1240_v38  ;;  %v1078_v61 = vpop.f32.mrb[27].mxu1 }
 0x2fe   : > { %v1079_v62 = vadd.f32 %v1240_v38, %v1078_v61 }
 0x2ff   : > { %1119 = vst.msk [vmem:[%s1893_s22 + $0x58] sm:$0xff] %vm1107_vm3, %v1084_v60 }
 0x300   : > { %1118 = vst.msk [vmem:[%s1893_s22 + $0x50] sm:$0xff] %vm1107_vm3, %v1079_v62 }
 0x304   : > { %v1452_v63 = vpop.f32.mrb[28].mxu1 }
 0x305   : > { %v1094_v0 = vadd.f32 %v1452_v63, %v1240_v38  ;;  %v1088_v1 = vpop.f32.mrb[29].mxu1 }
 0x306   : > { %v1089_v2 = vadd.f32 %v1240_v38, %v1088_v1 }
 0x307   : > { %1121 = vst.msk [vmem:[%s1893_s22 + $0x68] sm:$0xff] %vm1107_vm3, %v1094_v0 }
 0x308   : > { %1120 = vst.msk [vmem:[%s1893_s22 + $0x60] sm:$0xff] %vm1107_vm3, %v1089_v2 }
 0x30c   : > { %v1455_v3 = vpop.f32.mrb[30].mxu1 }
 0x30d   : > { %v1104_v4 = vadd.f32 %v1455_v3, %v1240_v38  ;;  %v1098_v5 = vpop.f32.mrb[31].mxu1 }
 0x30e   : > { %v1099_v6 = vadd.f32 %v1240_v38, %v1098_v5 }
 0x30f   : > { %1123 = vst.msk [vmem:[%s1893_s22 + $0x78] sm:$0xff] %vm1107_vm3, %v1104_v4 }
 0x310   : > { %1122 = vst.msk [vmem:[%s1893_s22 + $0x70] sm:$0xff] %vm1107_vm3, %v1099_v6 }
 0x311 PF: > { %s17_s24 = sadd.s32 1, %s1590_s24  }
 0x312   : > { %p14_p4 = scmp.ge.s32.totalorder %s17_s24, 4  }
 0x314   :  { %16 = sbr.rel (!%p14_p4) target bundleno = 1 (0x1), region = 78 }

</bundles_post_ra>
